<compile_context>
chip_gen: v7x
topology: tpu7x:2x2x1
jax: 0.10.0
libtpu: 0.0.40
codegen_flags: <defaults>
</compile_context>

<pallas_src>
import functools

import jax
import jax.numpy as jnp
from jax.experimental import pallas as pl
from jax.experimental.pallas import tpu as pltpu

_LANE = 128


def _round_up(v, m):
    return ((v + m - 1) // m) * m


@functools.lru_cache(maxsize=None)
def _tpu_config():
    """Returns (vmem_limit_bytes, vmem_budget_bytes, num_tensorcores_per_chip)."""
    vmem_cap = 64 * 1024 * 1024                 # conservative fallback (v7x per-TC)
    try:
        vmem_cap = int(pltpu.get_tpu_info().vmem_capacity_bytes)
    except Exception:
        pass
    num_tc = 1
    try:
        kind = jax.devices()[0].device_kind.lower()
        if "v7" in kind or "7x" in kind:
            num_tc = 2                          # v7x: two TensorCores share the grid
    except Exception:
        pass
    # Above v5e's 16 MiB scoped default, below v7x's 64 MiB physical per TC.
    vmem_limit = min(vmem_cap * 3 // 4, 96 * 1024 * 1024)
    return vmem_limit, vmem_limit // 2, num_tc


def _pick_tm(M, K, Nout, tm_max=8192, in_bytes=2, out_bytes=4):
    """Lane-axis tile: as big as fits (amortizes the ~0.35us per-grid-step
    overhead).  Only on 2-TC chips do we force >= 2, 256-aligned steps so both
    TensorCores get work; single-TC chips get one big block."""
    _, budget, num_tc = _tpu_config()
    tm = min(tm_max, _round_up(M, _LANE))

    def vmem_bytes(t):   # double-buffered streamed x/out blocks + resident W, bias
        return (2 * K * t * in_bytes + 2 * Nout * t * out_bytes
                + Nout * K * in_bytes + Nout * 4)

    while tm > _LANE and vmem_bytes(tm) > budget:
        tm -= _LANE
    if num_tc > 1 and M > 2 * _LANE:
        if pl.cdiv(M, tm) < 2:                  # >= 2 grid steps: feed both TCs
            tm = max(_LANE, _round_up(pl.cdiv(M, 2), _LANE))
        if tm > 256 and tm % 256:               # 256-aligned for the 2x256^2 MXU
            tm = (tm // 256) * 256
    return tm


# --------------------------------------------------------------------------
# Pallas kernel: per-group O = W @ X + b over lane-dense M tiles
# --------------------------------------------------------------------------
def _wx_bias_kernel(w_ref, x_ref, b_ref, o_ref):
    acc = jnp.dot(w_ref[...], x_ref[...], preferred_element_type=jnp.float32)
    o_ref[...] = (acc + b_ref[...]).astype(o_ref.dtype)     # bias broadcast on lanes


def pallas_grouped_matmul_bias(w, xslab, bias=None, *, tm_max=8192):
    """w: (G, N, K), xslab: (G, K, M) (same dtype, e.g. bf16), bias: (G, N) f32.
    Returns (G, N, M) float32 with per-group O[g] = W[g] @ X[g] + b[g]."""
    G, N, K = w.shape
    Gx, Kx, M = xslab.shape
    assert G == Gx and K == Kx
    if bias is None:
        bias = jnp.zeros((G, N), jnp.float32)
    bias3d = bias.reshape(G, N, 1).astype(jnp.float32)

    vmem_limit, _, _ = _tpu_config()
    in_bytes = jnp.dtype(xslab.dtype).itemsize
    tm = _pick_tm(M, K, N, tm_max=tm_max, in_bytes=in_bytes)
    grid = (G, pl.cdiv(M, tm))          # boundary M tile masked by Pallas
    return pl.pallas_call(
        _wx_bias_kernel,
        out_shape=jax.ShapeDtypeStruct((G, N, M), jnp.float32),
        grid=grid,
        in_specs=[
            pl.BlockSpec((None, N, K), lambda g, i: (g, 0, 0)),   # per-group weight
            pl.BlockSpec((None, K, tm), lambda g, i: (g, 0, i)),  # streamed slab
            pl.BlockSpec((None, N, 1), lambda g, i: (g, 0, 0)),   # per-group bias
        ],
        out_specs=pl.BlockSpec((None, N, tm), lambda g, i: (g, 0, i)),
        compiler_params=pltpu.CompilerParams(
            dimension_semantics=("parallel", "parallel"),
            vmem_limit_bytes=vmem_limit),
    )(w, xslab, bias3d)


# --------------------------------------------------------------------------
# Forward pass (coordinate glue in plain JAX, hot matmuls in Pallas)
# --------------------------------------------------------------------------
def auto_pad(k):
    return k // 2


def _im2col_ckm(x_pad, k, stride, h_out, w_out, dtype):
    """(B, C, Hp, Wp) -> (C*k*k, B*h*w); row = c*k*k + dy*k + dx (lane-dense M).
    Built directly in the target layout (only the small input is transposed)."""
    B, C = x_pad.shape[0], x_pad.shape[1]
    xt = jnp.transpose(x_pad, (1, 0, 2, 3))              # small (C, B, Hp, Wp) copy
    cols = []
    for dy in range(k):
        for dx in range(k):
            cols.append(xt[:, :, dy:dy + h_out * stride:stride,
                           dx:dx + w_out * stride:stride])
    col = jnp.stack(cols, axis=1).astype(dtype)          # (C, k*k, B, h, w)
    return col.reshape(C * k * k, B * h_out * w_out)


def deform_conv_forward(x, offset_w, offset_b, conv_w, conv_b=None, *,
                        kernel_size, stride, padding, groups):
    B, C, H, W = x.shape
    k = kernel_size
    n = k * k
    f32, bf16 = jnp.float32, jnp.bfloat16

    # ---- offset conv: k x k, stride, padding=k//2 -> Pallas (2n, M) matmul ----
    pad_oc = auto_pad(k)
    h = (H + 2 * pad_oc - k) // stride + 1
    w = (W + 2 * pad_oc - k) // stride + 1
    M = B * h * w
    # TODO(synk): for large maps the k*k taps should be folded into the Pallas
    # kernel as a reduction grid axis instead of staging im2col in HBM; here it
    # is staged once, in bf16, already in the target layout.
    x_oc = jnp.pad(x, ((0, 0), (0, 0), (pad_oc, pad_oc), (pad_oc, pad_oc)))
    patches = _im2col_ckm(x_oc, k, stride, h, w, bf16)              # (C*n, M) bf16
    w_off = offset_w.reshape(2 * n, C * n).astype(bf16)
    offset = pallas_grouped_matmul_bias(
        w_off[None], patches[None],
        offset_b.astype(f32).reshape(1, 2 * n))[0]                  # (2n, M) f32

    # ---- zero padding of the feature map ----
    if padding:
        x = jnp.pad(x, ((0, 0), (0, 0), (padding, padding), (padding, padding)))
    Hp, Wp = x.shape[2], x.shape[3]

    # ---- p = p0 + pn + offset, lane-dense (n, M) components, f32 ----
    r = jnp.arange(-(k // 2), k // 2 + 1)
    yy, xx = jnp.meshgrid(r, r, indexing="ij")
    pn_y = yy.reshape(n, 1).astype(f32)
    pn_x = xx.reshape(n, 1).astype(f32)
    ay = jnp.arange(k // 2, h * stride + 1, stride)                 # reference formula
    ax = jnp.arange(k // 2, w * stride + 1, stride)
    y0, x0 = jnp.meshgrid(ay, ax, indexing="ij")                    # (h, w)
    p0_y = jnp.tile(y0.reshape(-1), B).astype(f32).reshape(1, M)
    p0_x = jnp.tile(x0.reshape(-1), B).astype(f32).reshape(1, M)
    py = p0_y + pn_y + offset[:n]                                   # (n, M)
    px = p0_x + pn_x + offset[n:]

    # ---- corner coords & bilinear gates (reproduces the reference exactly,
    #      including the .long() truncation of g_lt / g_rb's second factor) ----
    fy, fx = jnp.floor(py), jnp.floor(px)
    q_lt_y = jnp.clip(fy, 0, Hp - 1)
    q_lt_x = jnp.clip(fx, 0, Wp - 1)
    q_rb_y = jnp.clip(fy + 1, 0, Hp - 1)
    q_rb_x = jnp.clip(fx + 1, 0, Wp - 1)
    py_c = jnp.clip(py, 0, Hp - 1)
    px_c = jnp.clip(px, 0, Wp - 1)
    g_lt = (1 - (py_c - q_lt_y)) * (1 - (px_c - q_lt_x)).astype(jnp.int32)
    g_rb = (1 - (q_rb_y - py_c)) * (1 - (q_rb_x - px_c)).astype(jnp.int32)
    g_lb = (1 - (py_c - q_lt_y)) * (1 - (q_rb_x - px_c))
    g_rt = (1 - (q_rb_y - py_c)) * (1 - (px_c - q_lt_x))

    # ---- 4 corner gathers + bilinear combine in one fusion, emitting the
    #      final-conv slab directly in (C, n, M) row order: no CK*M transpose.
    # TODO(synk): the data-dependent per-pixel gather (torch.gather) has no
    # clean rectangular-BlockSpec Pallas equivalent; it stays in XLA here.
    HWp = Hp * Wp
    x_cb = jnp.transpose(x, (1, 0, 2, 3)).reshape(C, B * HWp).astype(bf16)
    batch_off = ((jnp.arange(M, dtype=jnp.int32) // (h * w)) * HWp).reshape(1, M)

    def gather(qy, qx):
        idx = batch_off + qy.astype(jnp.int32) * Wp + qx.astype(jnp.int32)
        return jnp.take(x_cb, idx, axis=1, mode="clip")             # (C, n, M) bf16

    x_off = (g_lt[None] * gather(q_lt_y, q_lt_x)
             + g_rb[None] * gather(q_rb_y, q_rb_x)
             + g_lb[None] * gather(q_lt_y, q_rb_x)
             + g_rt[None] * gather(q_rb_y, q_lt_x))                 # (C, n, M) f32

    # ---- final k x k / stride-k grouped conv == per-group matmul on (cpg*n, M) ----
    OC = conv_w.shape[0]
    G, cpg, opg = groups, C // groups, OC // groups
    slab = x_off.astype(bf16).reshape(G, cpg * n, M)                # pure view: rows grouped
    wg = conv_w.reshape(G, opg, cpg * n).astype(bf16)               # permute tiny weight
    bg = None if conv_b is None else conv_b.astype(f32).reshape(G, opg)
    out = pallas_grouped_matmul_bias(wg, slab, bg)                  # (G, opg, M) f32
    return out.reshape(OC, B, h, w).transpose(1, 0, 2, 3)           # (B, OC, h, w)


# --------------------------------------------------------------------------
if __name__ == "__main__":
    # DeformConv(in_chans=4, out_chans=8, kernel_size=3, stride=1, padding=1,
    #            groups=1, bias=False)
    B, C, H, W = 2, 4, 16, 16
    OC, K, STRIDE, PAD, GROUPS = 8, 3, 1, 1, 1
    n = K * K

    key = jax.random.PRNGKey(0)
    kx, kw1, kb1, kw2 = jax.random.split(key, 4)
    x = jax.random.normal(kx, (B, C, H, W), dtype=jnp.float32)
    offset_w = jax.random.normal(kw1, (2 * n, C, K, K), dtype=jnp.float32) * 0.05
    offset_b = jax.random.normal(kb1, (2 * n,), dtype=jnp.float32) * 0.05
    conv_w = jax.random.normal(kw2, (OC, C // GROUPS, K, K), dtype=jnp.float32) * 0.1

    fwd = jax.jit(functools.partial(
        deform_conv_forward,
        kernel_size=K, stride=STRIDE, padding=PAD, groups=GROUPS))
    out = fwd(x, offset_w, offset_b, conv_w)
    out = jax.block_until_ready(out)
    assert out.shape == (B, OC, H, W), out.shape
    print("KERNEL_OK")
</pallas_src>

<mosaic_0001>
module attributes {stable_mosaic.version = 11 : i64} {
  func.func @_wx_bias_kernel(%arg0: i32, %arg1: i32, %arg2: memref<1x18x36xbf16, #tpu.memory_space<vmem>>, %arg3: memref<1x36x512xbf16, #tpu.memory_space<vmem>>, %arg4: memref<1x18x1xf32, #tpu.memory_space<vmem>>, %arg5: memref<1x18x512xf32, #tpu.memory_space<vmem>>) attributes {dimension_semantics = [#tpu.dimension_semantics<parallel>, #tpu.dimension_semantics<parallel>], iteration_bounds = array<i64: 1, 1>, scalar_prefetch = 0 : i64, scratch_operands = 0 : i64, tpu.core_type = #tpu.core_type<tc>, window_params = [{transform_indices = @transform_0, window_bounds = array<i64: 1, 18, 36>}, {transform_indices = @transform_1, window_bounds = array<i64: 1, 36, 512>}, {transform_indices = @transform_2, window_bounds = array<i64: 1, 18, 1>}, {transform_indices = @transform_3, window_bounds = array<i64: 1, 18, 512>}]} {
    %c0 = arith.constant 0 : index
    %c0_0 = arith.constant 0 : index
    %c0_1 = arith.constant 0 : index
    %0 = vector.load %arg2[%c0, %c0_0, %c0_1] : memref<1x18x36xbf16, #tpu.memory_space<vmem>>, vector<1x18x36xbf16>
    %1 = vector.shape_cast %0 : vector<1x18x36xbf16> to vector<18x36xbf16>
    %c0_2 = arith.constant 0 : index
    %c0_3 = arith.constant 0 : index
    %c0_4 = arith.constant 0 : index
    %2 = vector.load %arg3[%c0_2, %c0_3, %c0_4] : memref<1x36x512xbf16, #tpu.memory_space<vmem>>, vector<1x36x512xbf16>
    %3 = vector.shape_cast %2 : vector<1x36x512xbf16> to vector<36x512xbf16>
    %cst = arith.constant dense<0.000000e+00> : vector<18x512xf32>
    %4 = tpu.matmul %1, %3, %cst {dimension_numbers = #tpu.dot_dimension_numbers<[1], [0], [0], [1], [0, 0, 1, 1], [], []>} : vector<18x36xbf16>, vector<36x512xbf16>, vector<18x512xf32> -> vector<18x512xf32>
    %c0_5 = arith.constant 0 : index
    %c0_6 = arith.constant 0 : index
    %c0_7 = arith.constant 0 : index
    %5 = vector.load %arg4[%c0_5, %c0_6, %c0_7] : memref<1x18x1xf32, #tpu.memory_space<vmem>>, vector<1x18x1xf32>
    %6 = vector.shape_cast %5 : vector<1x18x1xf32> to vector<18x1xf32>
    %7 = vector.broadcast %6 : vector<18x1xf32> to vector<18x512xf32>
    %8 = arith.addf %4, %7 : vector<18x512xf32>
    %c0_8 = arith.constant 0 : index
    %c0_9 = arith.constant 0 : index
    %c0_10 = arith.constant 0 : index
    %9 = vector.load %arg5[%c0_8, %c0_9, %c0_10] : memref<1x18x512xf32, #tpu.memory_space<vmem>>, vector<1x18x512xf32>
    %10 = vector.shape_cast %9 : vector<1x18x512xf32> to vector<18x512xf32>
    %11 = vector.shape_cast %8 : vector<18x512xf32> to vector<1x18x512xf32>
    tpu.vector_store %arg5[%c0_8, %c0_9, %c0_10], %11 {strides = array<i32>} : memref<1x18x512xf32, #tpu.memory_space<vmem>>, vector<1x18x512xf32>,
    return
  }
  func.func @transform_0(%arg0: i32, %arg1: i32) -> (i32, i32, i32) {
    %c0_i32 = arith.constant 0 : i32
    %c0_i32_0 = arith.constant 0 : i32
    %c0_i32_1 = arith.constant 0 : i32
    return %arg0, %c0_i32, %c0_i32_0 : i32, i32, i32
  }
  func.func @transform_1(%arg0: i32, %arg1: i32) -> (i32, i32, i32) {
    %c0_i32 = arith.constant 0 : i32
    %c0_i32_0 = arith.constant 0 : i32
    return %arg0, %c0_i32, %arg1 : i32, i32, i32
  }
  func.func @transform_2(%arg0: i32, %arg1: i32) -> (i32, i32, i32) {
    %c0_i32 = arith.constant 0 : i32
    %c0_i32_0 = arith.constant 0 : i32
    %c0_i32_1 = arith.constant 0 : i32
    return %arg0, %c0_i32, %c0_i32_0 : i32, i32, i32
  }
  func.func @transform_3(%arg0: i32, %arg1: i32) -> (i32, i32, i32) {
    %c0_i32 = arith.constant 0 : i32
    %c0_i32_0 = arith.constant 0 : i32
    return %arg0, %c0_i32, %arg1 : i32, i32, i32
  }
}

module attributes {stable_mosaic.version = 11 : i64} {
  func.func @_wx_bias_kernel(%arg0: i32, %arg1: i32, %arg2: memref<1x8x36xbf16, #tpu.memory_space<vmem>>, %arg3: memref<1x36x512xbf16, #tpu.memory_space<vmem>>, %arg4: memref<1x8x1xf32, #tpu.memory_space<vmem>>, %arg5: memref<1x8x512xf32, #tpu.memory_space<vmem>>) attributes {dimension_semantics = [#tpu.dimension_semantics<parallel>, #tpu.dimension_semantics<parallel>], iteration_bounds = array<i64: 1, 1>, scalar_prefetch = 0 : i64, scratch_operands = 0 : i64, tpu.core_type = #tpu.core_type<tc>, window_params = [{transform_indices = @transform_0, window_bounds = array<i64: 1, 8, 36>}, {transform_indices = @transform_1, window_bounds = array<i64: 1, 36, 512>}, {transform_indices = @transform_2, window_bounds = array<i64: 1, 8, 1>}, {transform_indices = @transform_3, window_bounds = array<i64: 1, 8, 512>}]} {
    %c0 = arith.constant 0 : index
    %c0_0 = arith.constant 0 : index
    %c0_1 = arith.constant 0 : index
    %0 = vector.load %arg2[%c0, %c0_0, %c0_1] : memref<1x8x36xbf16, #tpu.memory_space<vmem>>, vector<1x8x36xbf16>
    %1 = vector.shape_cast %0 : vector<1x8x36xbf16> to vector<8x36xbf16>
    %c0_2 = arith.constant 0 : index
    %c0_3 = arith.constant 0 : index
    %c0_4 = arith.constant 0 : index
    %2 = vector.load %arg3[%c0_2, %c0_3, %c0_4] : memref<1x36x512xbf16, #tpu.memory_space<vmem>>, vector<1x36x512xbf16>
    %3 = vector.shape_cast %2 : vector<1x36x512xbf16> to vector<36x512xbf16>
    %cst = arith.constant dense<0.000000e+00> : vector<8x512xf32>
    %4 = tpu.matmul %1, %3, %cst {dimension_numbers = #tpu.dot_dimension_numbers<[1], [0], [0], [1], [0, 0, 1, 1], [], []>} : vector<8x36xbf16>, vector<36x512xbf16>, vector<8x512xf32> -> vector<8x512xf32>
    %c0_5 = arith.constant 0 : index
    %c0_6 = arith.constant 0 : index
    %c0_7 = arith.constant 0 : index
    %5 = vector.load %arg4[%c0_5, %c0_6, %c0_7] : memref<1x8x1xf32, #tpu.memory_space<vmem>>, vector<1x8x1xf32>
    %6 = vector.shape_cast %5 : vector<1x8x1xf32> to vector<8x1xf32>
    %7 = vector.broadcast %6 : vector<8x1xf32> to vector<8x512xf32>
    %8 = arith.addf %4, %7 : vector<8x512xf32>
    %c0_8 = arith.constant 0 : index
    %c0_9 = arith.constant 0 : index
    %c0_10 = arith.constant 0 : index
    %9 = vector.load %arg5[%c0_8, %c0_9, %c0_10] : memref<1x8x512xf32, #tpu.memory_space<vmem>>, vector<1x8x512xf32>
    %10 = vector.shape_cast %9 : vector<1x8x512xf32> to vector<8x512xf32>
    %11 = vector.shape_cast %8 : vector<8x512xf32> to vector<1x8x512xf32>
    tpu.vector_store %arg5[%c0_8, %c0_9, %c0_10], %11 {strides = array<i32>} : memref<1x8x512xf32, #tpu.memory_space<vmem>>, vector<1x8x512xf32>,
    return
  }
  func.func @transform_0(%arg0: i32, %arg1: i32) -> (i32, i32, i32) {
    %c0_i32 = arith.constant 0 : i32
    %c0_i32_0 = arith.constant 0 : i32
    %c0_i32_1 = arith.constant 0 : i32
    return %arg0, %c0_i32, %c0_i32_0 : i32, i32, i32
  }
  func.func @transform_1(%arg0: i32, %arg1: i32) -> (i32, i32, i32) {
    %c0_i32 = arith.constant 0 : i32
    %c0_i32_0 = arith.constant 0 : i32
    return %arg0, %c0_i32, %arg1 : i32, i32, i32
  }
  func.func @transform_2(%arg0: i32, %arg1: i32) -> (i32, i32, i32) {
    %c0_i32 = arith.constant 0 : i32
    %c0_i32_0 = arith.constant 0 : i32
    %c0_i32_1 = arith.constant 0 : i32
    return %arg0, %c0_i32, %c0_i32_0 : i32, i32, i32
  }
  func.func @transform_3(%arg0: i32, %arg1: i32) -> (i32, i32, i32) {
    %c0_i32 = arith.constant 0 : i32
    %c0_i32_0 = arith.constant 0 : i32
    return %arg0, %c0_i32, %arg1 : i32, i32, i32
  }
}

</mosaic_0001>

<bundles_post_ra>
// kernel: deform_conv_forward.2
= control target key start
LH: loop header
LB: loop body
LE: loop exit
PB: predicated region body
PF: predicated region fallthrough
CT: control target
= control target key end

     0   :  { %v283_v1 = vmov 0   ;;  %vm111_vm0 = vcmask 1041408   ;;  %vm104_vm1 = vcmask 293888   ;;  %s389_s1 = inlined_call_operand.vmem [shape: bf16[1,36,512], index: 1, kind: input, shape index: {}]   ;;  %s390_s2 = inlined_call_operand.vmem [shape: f32[1,18,1], index: 2, kind: input, shape index: {}]   ;;  %s391_s0 = inlined_call_operand.vmem [shape: bf16[1,18,36], index: 0, kind: input, shape index: {}]   ;;  %s392_s3 = inlined_call_operand.vmem [shape: f32[1,18,512], index: 3, kind: output, shape index: {}]  }
   0x1   :  { %v265_v0 = vld [vmem:[%s389_s1 + $0x4] ss:$16 sps:$4 sm:$0xff]   ;;  %156 = vmatprep.mubr.bf16.mxu0 %v283_v1  ;;  %207 = vmatprep.mubr.bf16.mxu1 %v283_v1  ;;  %v267_v2 = vld [vmem:[%s389_s1 + $0xc] ss:$16 sps:$4 sm:$0xff]   ;;  %v269_v3 = vld [vmem:[%s389_s1] ss:$16 sps:$4 sm:$0xff]  }
   0x2   :  { %263 = vset.pattern.permute.xlu0 %v283_v1  ;;  %264 = vset.pattern.permute.xlu1 %v283_v1  ;;  %v270_v4 = vld [vmem:[%s389_s1 + $0x8] ss:$16 sps:$4 sm:$0xff]   ;;  %v271_v5 = vld [vmem:[%s389_s1 + $0x24] ss:$16 sps:$4 sm:$0xff]   ;;  %v273_v6 = vld [vmem:[%s389_s1 + $0x2c] ss:$16 sps:$4 sm:$0xff]  }
   0x3   :  { %124 = vmatprep.subr.bf16.mxu0 %v265_v0  ;;  %175 = vmatprep.subr.bf16.mxu1 %v267_v2  ;;  %v275_v7 = vld [vmem:[%s389_s1 + $0x20] ss:$16 sps:$4 sm:$0xff]   ;;  %v276_v8 = vld [vmem:[%s389_s1 + $0x28] ss:$16 sps:$4 sm:$0xff]  }
   0x4   :  { %125 = vmatpush1.bf16.msra.mxu0 %v269_v3  ;;  %176 = vmatpush1.bf16.msra.mxu1 %v270_v4  ;;  %v26_v9 = vld [vmem:[%s389_s1 + $0x40] sm:$0x33]  ;;  %v27_v10 = vld [vmem:[%s389_s1 + $0x48] sm:$0x33]  ;;  %v30_v16 = vld [vmem:[%s390_s2 + $0x10] sm:$0x3] }
   0x5   :  { %126 = vmatprep.subr.bf16.mxu0 %v271_v5  ;;  %177 = vmatprep.subr.bf16.mxu1 %v273_v6  ;;  %v253_v11 = vcombine.high %v26_v9, %v26_v9  ;;  %v255_v12 = vcombine.high %v27_v10, %v27_v10  ;;  %v252_v13 = vcombine.low %v26_v9, %v26_v9  ;;  %v28_v15 = vld [vmem:[%s390_s2] sm:$0xff]  ;;  %v29_v20 = vld [vmem:[%s390_s2 + $0x8] sm:$0xff] }
   0x6   :  { %v254_v14 = vcombine.low %v27_v10, %v27_v10  ;;  %33 = vperm.xlu0 %263, %v28_v15   ;;  %43 = vperm.xlu1 %264, %v30_v16   ;;  %v281_v19 = vld [vmem:[%s391_s0] sm:$0xff]   ;;  %v282_v21 = vld [vmem:[%s391_s0 + $0x8] ss:$0 sps:$4 sm:$0x11]  }
   0x7   :  { %v113_v17 = vsel %vm111_vm0, %v252_v13, 0 }
   0x8   :  { %127 = vmatpush1.bf16.msra.mxu0 %v275_v7  ;;  %178 = vmatpush1.bf16.msra.mxu1 %v276_v8  ;;  %v119_v18 = vsel %vm111_vm0, %v254_v14, 0 }
   0x9   :  { %256 = vmatprep.subr.msk.bf16.mxu0 %vm111_vm0, %v253_v11  ;;  %259 = vmatprep.subr.msk.bf16.mxu1 %vm111_vm0, %v255_v12 }
   0xa   :  { %38 = vperm.xlu0 %263, %v29_v20  }
   0xc   :  { %129 = vmatpush1.bf16.msra.mxu0 %v113_v17  ;;  %180 = vmatpush1.bf16.msra.mxu1 %v119_v18 }
   0xf   :  { %257 = vmatmul.mubr.msk.bf16.vlgmr.msra.gmra.mrb[0].mxu0 %vm104_vm1, %v281_v19  ;;  %260 = vmatmul.mubr.msk.bf16.vlgmr.msra.gmra.mrb[0].mxu1 %vm104_vm1, %v281_v19 }
  0x10   :  { %166 = vmatprep.mubr.bf16.mxu0 %v283_v1  ;;  %217 = vmatprep.mubr.bf16.mxu1 %v283_v1 }
  0x17   :  { %258 = vmatmul.mubr.msk.bf16.gmra.mrb[4].mxu0 %vm104_vm1, %v282_v21  ;;  %261 = vmatmul.mubr.msk.bf16.gmra.mrb[4].mxu1 %vm104_vm1, %v282_v21 }
  0x85   :  { %v34_v22 = vpop.permute.xlu0 %33  ;;  %v44_v40 = vpop.permute.xlu1 %43 }
  0x89   :  { %v39_v23 = vpop.permute.xlu0 %38 }
  0xe2   :  { %v158_v24 = vpop.f32.mrb[0].mxu0  ;;  %v209_v25 = vpop.f32.mrb[0].mxu1 }
  0xe3   :  { %v159_v26 = vadd.f32 %v158_v24, %v34_v22  ;;  %v210_v27 = vadd.f32 %v209_v25, %v34_v22  ;;  %v160_v28 = vpop.f32.mrb[1].mxu0  ;;  %v211_v29 = vpop.f32.mrb[1].mxu1 }
  0xe4   :  { %v161_v30 = vadd.f32 %v160_v28, %v34_v22  ;;  %v212_v31 = vadd.f32 %v211_v29, %v34_v22  ;;  %v162_v32 = vpop.f32.mrb[2].mxu0  ;;  %v213_v33 = vpop.f32.mrb[2].mxu1 }
  0xe5   :  { %226 = vst [vmem:[%s392_s3] sm:$0xff] %v159_v26  ;;  %228 = vst [vmem:[%s392_s3 + $0x10] sm:$0xff] %v210_v27  ;;  %v163_v34 = vadd.f32 %v162_v32, %v39_v23  ;;  %v214_v35 = vadd.f32 %v213_v33, %v39_v23  ;;  %v164_v36 = vpop.f32.mrb[3].mxu0  ;;  %v215_v37 = vpop.f32.mrb[3].mxu1 }
  0xe6   :  { %227 = vst [vmem:[%s392_s3 + $0x8] sm:$0xff] %v161_v30  ;;  %229 = vst [vmem:[%s392_s3 + $0x18] sm:$0xff] %v212_v31  ;;  %v165_v38 = vadd.f32 %v164_v36, %v39_v23  ;;  %v216_v39 = vadd.f32 %v215_v37, %v39_v23 }
  0xe7   :  { %230 = vst [vmem:[%s392_s3 + $0x20] sm:$0xff] %v163_v34  ;;  %232 = vst [vmem:[%s392_s3 + $0x30] sm:$0xff] %v214_v35 }
  0xe8   :  { %231 = vst [vmem:[%s392_s3 + $0x28] sm:$0xff] %v165_v38  ;;  %233 = vst [vmem:[%s392_s3 + $0x38] sm:$0xff] %v216_v39 }
  0xea   :  { %v168_v41 = vpop.f32.mrb[4].mxu0  ;;  %v219_v42 = vpop.f32.mrb[4].mxu1 }
  0xeb   :  { %v169_v43 = vadd.f32 %v168_v41, %v44_v40  ;;  %v220_v44 = vadd.f32 %v219_v42, %v44_v40  ;;  %v170_v45 = vpop.f32.mrb[5].mxu0  ;;  %v221_v46 = vpop.f32.mrb[5].mxu1 }
  0xec   :  { %v171_v47 = vadd.f32 %v170_v45, %v44_v40  ;;  %v222_v48 = vadd.f32 %v221_v46, %v44_v40  ;;  %v172_v49 = vpop.f32.mrb[6].mxu0  ;;  %v223_v50 = vpop.f32.mrb[6].mxu1 }
  0xed   :  { %234 = vst [vmem:[%s392_s3 + $0x40] sm:$0x3] %v169_v43  ;;  %236 = vst [vmem:[%s392_s3 + $0x50] sm:$0x3] %v220_v44  ;;  %v173_v51 = vpop.f32.mrb[7].mxu0  ;;  %v224_v52 = vpop.f32.mrb[7].mxu1 }
  0xee   :  { %235 = vst [vmem:[%s392_s3 + $0x48] sm:$0x3] %v171_v47  ;;  %237 = vst [vmem:[%s392_s3 + $0x58] sm:$0x3] %v222_v48 }

// kernel: deform_conv_forward.3
= control target key start
LH: loop header
LB: loop body
LE: loop exit
PB: predicated region body
PF: predicated region fallthrough
CT: control target
= control target key end

     0   :  { %v223_v1 = vmov 0   ;;  %vm86_vm0 = vcmask 1041408   ;;  %vm82_vm1 = vcmask 293888   ;;  %s296_s1 = inlined_call_operand.vmem [shape: bf16[1,36,512], index: 1, kind: input, shape index: {}]   ;;  %s297_s2 = inlined_call_operand.vmem [shape: f32[1,8,1], index: 2, kind: input, shape index: {}]   ;;  %s298_s0 = inlined_call_operand.vmem [shape: bf16[1,8,36], index: 0, kind: input, shape index: {}]   ;;  %s299_s3 = inlined_call_operand.vmem [shape: f32[1,8,512], index: 3, kind: output, shape index: {}]  }
   0x1   :  { %v207_v0 = vld [vmem:[%s296_s1 + $0x4] ss:$16 sps:$4 sm:$0xff]   ;;  %131 = vmatprep.mubr.bf16.mxu0 %v223_v1  ;;  %172 = vmatprep.mubr.bf16.mxu1 %v223_v1  ;;  %v209_v2 = vld [vmem:[%s296_s1 + $0xc] ss:$16 sps:$4 sm:$0xff]   ;;  %v211_v3 = vld [vmem:[%s296_s1] ss:$16 sps:$4 sm:$0xff]  }
   0x2   :  { %206 = vset.pattern.permute.xlu0 %v223_v1  ;;  %99 = vmatprep.subr.bf16.mxu0 %v207_v0  ;;  %v212_v4 = vld [vmem:[%s296_s1 + $0x8] ss:$16 sps:$4 sm:$0xff]   ;;  %v213_v5 = vld [vmem:[%s296_s1 + $0x24] ss:$16 sps:$4 sm:$0xff]   ;;  %v215_v6 = vld [vmem:[%s296_s1 + $0x2c] ss:$16 sps:$4 sm:$0xff]  }
   0x3   :  { %140 = vmatprep.subr.bf16.mxu1 %v209_v2  ;;  %100 = vmatpush1.bf16.msra.mxu0 %v211_v3  ;;  %v217_v7 = vld [vmem:[%s296_s1 + $0x20] ss:$16 sps:$4 sm:$0xff]   ;;  %v218_v8 = vld [vmem:[%s296_s1 + $0x28] ss:$16 sps:$4 sm:$0xff]  }
   0x4   :  { %141 = vmatpush1.bf16.msra.mxu1 %v212_v4  ;;  %101 = vmatprep.subr.bf16.mxu0 %v213_v5  ;;  %v24_v9 = vld [vmem:[%s296_s1 + $0x40] sm:$0x33]  ;;  %v25_v10 = vld [vmem:[%s296_s1 + $0x48] sm:$0x33] }
   0x5   :  { %142 = vmatprep.subr.bf16.mxu1 %v215_v6  ;;  %v198_v11 = vcombine.high %v24_v9, %v24_v9  ;;  %v200_v12 = vcombine.high %v25_v10, %v25_v10  ;;  %v197_v13 = vcombine.low %v24_v9, %v24_v9  ;;  %v199_v14 = vcombine.low %v25_v10, %v25_v10  ;;  %v26_v15 = vld [vmem:[%s297_s2] sm:$0xff] }
   0x6   :  { %29 = vperm.xlu0 %206, %v26_v15   ;;  %v15_v18 = vld [vmem:[%s298_s0] sm:$0xf] }
   0x7   :  { %102 = vmatpush1.bf16.msra.mxu0 %v217_v7  ;;  %v88_v16 = vsel %vm86_vm0, %v197_v13, 0  ;;  %v94_v17 = vsel %vm86_vm0, %v199_v14, 0 }
   0x8   :  { %143 = vmatpush1.bf16.msra.mxu1 %v218_v8  ;;  %201 = vmatprep.subr.msk.bf16.mxu0 %vm86_vm0, %v198_v11 }
   0x9   :  { %203 = vmatprep.subr.msk.bf16.mxu1 %vm86_vm0, %v200_v12 }
   0xb   :  { %104 = vmatpush1.bf16.msra.mxu0 %v88_v16 }
   0xc   :  { %145 = vmatpush1.bf16.msra.mxu1 %v94_v17 }
   0xe   :  { %202 = vmatmul.mubr.msk.bf16.vlgmr.msra.gmra.mrb[0].mxu0 %vm82_vm1, %v15_v18 }
   0xf   :  { %204 = vmatmul.mubr.msk.bf16.vlgmr.msra.gmra.mrb[0].mxu1 %vm82_vm1, %v15_v18 }
  0x85   :  { %v30_v19 = vpop.permute.xlu0 %29 }
  0xe1   :  { %v133_v20 = vpop.f32.mrb[0].mxu0 }
  0xe2   :  { %v174_v21 = vpop.f32.mrb[0].mxu1  ;;  %v134_v22 = vadd.f32 %v133_v20, %v30_v19  ;;  %v135_v24 = vpop.f32.mrb[1].mxu0 }
  0xe3   :  { %v175_v23 = vadd.f32 %v174_v21, %v30_v19  ;;  %v176_v25 = vpop.f32.mrb[1].mxu1  ;;  %v136_v26 = vadd.f32 %v135_v24, %v30_v19  ;;  %v137_v28 = vpop.f32.mrb[2].mxu0 }
  0xe4   :  { %v177_v27 = vadd.f32 %v176_v25, %v30_v19  ;;  %v178_v29 = vpop.f32.mrb[2].mxu1  ;;  %181 = vst [vmem:[%s299_s3] sm:$0xff] %v134_v22  ;;  %v138_v30 = vpop.f32.mrb[3].mxu0 }
  0xe5   :  { %183 = vst [vmem:[%s299_s3 + $0x10] sm:$0xff] %v175_v23  ;;  %v179_v31 = vpop.f32.mrb[3].mxu1  ;;  %182 = vst [vmem:[%s299_s3 + $0x8] sm:$0xff] %v136_v26 }
  0xe6   :  { %184 = vst [vmem:[%s299_s3 + $0x18] sm:$0xff] %v177_v27 }

</bundles_post_ra>
